<compile_context>
chip_gen: v5e
topology: v5e:2x2
jax: 0.10.0
libtpu: 0.0.40
codegen_flags: <defaults>
</compile_context>

<pallas_src>
import functools
import math

import jax
import jax.numpy as jnp
from jax import lax
from jax.experimental import pallas as pl
from jax.experimental.pallas import tpu as pltpu


def _vdropout_kernel(seed_ref, x_ref, o_ref, *, keep: float, n_comp: int,
                     cells_per_row: int, chan_recip: int):
    """One grid step: (tile_rows, folded_lanes) slab of the lane-folded input."""
    inv_keep = 1.0 / keep
    tn, lanes = x_ref.shape

    # Lane-only quantities on a single sublane (1, lanes); broadcast later.
    lane = lax.broadcasted_iota(jnp.int32, (1, lanes), 1)
    if chan_recip > 0:
        # lane // n_comp via multiply-shift (validated in the wrapper).
        chan = (lane * jnp.int32(chan_recip)) >> 16
    else:
        chan = lane // jnp.int32(n_comp)

    # Global folded-row index for each tile row, (tn, 1).
    row = lax.broadcasted_iota(jnp.int32, (tn, 1), 0) + pl.program_id(0) * tn

    # cell = global_flat_element_index // n_comp  (identical for the n_comp
    # components of one vector channel); (tn,1) + (1,lanes) -> (tn, lanes).
    cell = (row * jnp.int32(cells_per_row) + chan).astype(jnp.uint32)

    # 2-round uint32 counter hash: logical shifts, well-defined wraparound muls.
    seed = seed_ref[0].astype(jnp.uint32)
    h = cell ^ (seed * jnp.uint32(0x9E3779B1))
    h = h * jnp.uint32(0x85EBCA6B)
    h = h ^ (h >> 16)
    h = h * jnp.uint32(0xC2B2AE35)

    # Top 24 bits -> uniform integer in [0, 2^24); keep with probability `keep`.
    r = (h >> 8).astype(jnp.int32)
    thresh = jnp.int32(int(round(keep * (1 << 24))))

    # Fold 1/keep into the select; multiply in f32, cast once at the store.
    scale = jnp.where(r < thresh, jnp.float32(inv_keep), jnp.float32(0.0))
    o_ref[...] = (x_ref[...].astype(jnp.float32) * scale).astype(o_ref.dtype)


def _per_buffer_budget_bytes() -> int:
    """Target bytes per pipelined buffer (4 buffers live: in/out double-buffered)."""
    if jax.default_backend() != "tpu":
        return 2 << 20
    try:
        info = pltpu.get_tpu_info()
        vmem = int(getattr(info, "vmem_capacity_bytes", 0) or 0)
    except Exception:
        vmem = 0
    if vmem and vmem <= (80 << 20):
        return 3 << 20   # v7x-class: 64 MiB VMEM, keep room for both TCs
    return 6 << 20       # v5e/v6e: 128 MiB physical (scoped limit raised below)


def _pick_tile_rows(n_rows: int, row_bytes: int, target_buf_bytes: int) -> int:
    t = max(1, target_buf_bytes // max(row_bytes, 1))
    if t >= n_rows:
        return n_rows                 # full array block: always legal
    t = (t // 8) * 8                  # sublane dim must be a multiple of 8
    if t < 8:
        return 8 if n_rows >= 8 else n_rows
    return t


def vdropout(x, drop_rate: float, seed: int, training: bool = True,
             tile_rows: int | None = None):
    """JAX wrapper reproducing _VDropout.forward semantics."""
    if not training or drop_rate == 0.0:
        return x
    if not (0.0 < drop_rate < 1.0):
        raise ValueError(f"drop_rate must be in (0, 1); got {drop_rate}")
    if x.ndim < 2:
        raise ValueError("expected vector-channel input of shape (..., C, D)")

    keep = 1.0 - float(drop_rate)
    *lead, n_chan, n_comp = x.shape
    n_rows = math.prod(lead) if lead else 1
    lanes = n_chan * n_comp

    # Fold rows into the lane axis until the lane width is a multiple of 128
    # (GVP C=16, D=3: 48 -> 384 lanes). fold=1 when already aligned.
    fold = 1 if lanes % 128 == 0 else 128 // math.gcd(lanes, 128)
    folded_lanes = fold * lanes
    cells_per_row = fold * n_chan       # mask cells per folded row

    # Validate the multiply-shift channel extraction (lane // n_comp) over the
    # folded lane range; fall back to vector integer division (tiny: (1, lanes)).
    recip = -(-65536 // n_comp)
    slack = n_comp * recip - 65536
    q_hi = (folded_lanes - 1) // n_comp
    ok = (q_hi * slack + (n_comp - 1) * recip < 65536
          and (folded_lanes - 1) * recip < 2 ** 31)
    chan_recip = recip if ok else 0

    # Flatten, zero-pad rows to a multiple of `fold`, fold into lane-dense slab.
    x_flat = x.reshape(n_rows, lanes)
    pad = (-n_rows) % fold
    if pad:
        x_flat = jnp.concatenate(
            [x_flat, jnp.zeros((pad, lanes), dtype=x_flat.dtype)], axis=0)
    n_folded = (n_rows + pad) // fold
    x2 = x_flat.reshape(n_folded, folded_lanes)

    seed_arr = jnp.asarray([int(seed) & 0x7FFFFFFF], dtype=jnp.int32)

    row_bytes = folded_lanes * x2.dtype.itemsize
    if tile_rows is None:
        tile_rows = _pick_tile_rows(n_folded, row_bytes, _per_buffer_budget_bytes())
    else:
        tile_rows = min(int(tile_rows), n_folded)
        if tile_rows != n_folded:
            tile_rows = max(8, (tile_rows // 8) * 8)
            tile_rows = min(tile_rows, n_folded)
    grid = (pl.cdiv(n_folded, tile_rows),)

    kernel = functools.partial(
        _vdropout_kernel, keep=keep, n_comp=int(n_comp),
        cells_per_row=int(cells_per_row), chan_recip=int(chan_recip))

    compiler_params = None
    if jax.default_backend() == "tpu":
        compiler_params = pltpu.CompilerParams(
            dimension_semantics=("parallel",),   # independent row tiles
            vmem_limit_bytes=32 << 20)           # clears v5e's 16 MiB default

    out2 = pl.pallas_call(
        kernel,
        out_shape=jax.ShapeDtypeStruct(x2.shape, x2.dtype),
        grid=grid,
        in_specs=[
            pl.BlockSpec(memory_space=pltpu.MemorySpace.SMEM),       # seed scalar
            pl.BlockSpec((tile_rows, folded_lanes), lambda i: (i, 0)),
        ],
        out_specs=pl.BlockSpec((tile_rows, folded_lanes), lambda i: (i, 0)),
        compiler_params=compiler_params,
        cost_estimate=pl.CostEstimate(
            flops=22 * x2.size,                    # ~hash int ops + select + mul
            transcendentals=0,
            bytes_accessed=2 * x2.size * x2.dtype.itemsize),
    )(seed_arr, x2)

    out = out2.reshape(n_rows + pad, lanes)
    if pad:
        out = out[:n_rows]
    return out.reshape(x.shape)


if __name__ == "__main__":
    key = jax.random.PRNGKey(0)
    # (nodes, vector channels, 3) — shapes consistent with GVP vector features.
    N, C, D = 128, 16, 3
    x = jax.random.normal(key, (N, C, D), dtype=jnp.float32)

    drop_rate = 0.25
    keep = 1.0 - drop_rate

    out = jax.block_until_ready(vdropout(x, drop_rate, seed=1234, training=True))
    assert out.shape == x.shape and out.dtype == x.dtype

    # Each (n, c) vector is either all-zero or exactly x * 1/(1-p).
    scaled = x * (1.0 / keep)
    per_chan_zero = jnp.all(out == 0.0, axis=-1)
    per_chan_kept = jnp.all(jnp.abs(out - scaled) < 1e-5, axis=-1)
    assert bool(jnp.all(per_chan_zero | per_chan_kept)), "mask semantics violated"

    drop_frac = float(jnp.mean(per_chan_zero.astype(jnp.float32)))
    assert 0.10 < drop_frac < 0.45, f"dropout fraction {drop_frac} far from {drop_rate}"

    # Tiling invariance: smaller row tiles (grid > 1) must reproduce the mask.
    out_tiled = jax.block_until_ready(
        vdropout(x, drop_rate, seed=1234, training=True, tile_rows=8))
    assert bool(jnp.all(out == out_tiled)), "mask must be tiling-invariant"

    # Row count not a multiple of the lane-fold factor (exercises padding path).
    xp = jax.random.normal(jax.random.PRNGKey(1), (50, C, D), dtype=jnp.float32)
    outp = jax.block_until_ready(vdropout(xp, drop_rate, seed=99, training=True))
    sp = xp * (1.0 / keep)
    zp = jnp.all(outp == 0.0, axis=-1)
    kp = jnp.all(jnp.abs(outp - sp) < 1e-5, axis=-1)
    assert bool(jnp.all(zp | kp)), "padded-path mask semantics violated"

    # bf16 path (f32 scale multiply, one cast at the store -> no 1/keep bias).
    xb = x.astype(jnp.bfloat16)
    outb = jax.block_until_ready(vdropout(xb, drop_rate, seed=7, training=True))
    ob = outb.astype(jnp.float32)
    rb = xb.astype(jnp.float32) * (1.0 / keep)
    zb = jnp.all(ob == 0.0, axis=-1)
    kb = jnp.all(jnp.abs(ob - rb) <= 0.02 * (jnp.abs(rb) + 1.0), axis=-1)
    assert bool(jnp.all(zb | kb)), "bf16 mask semantics violated"

    # Eval mode: identity.
    out_eval = jax.block_until_ready(vdropout(x, drop_rate, seed=1234, training=False))
    assert bool(jnp.all(out_eval == x))

    print("KERNEL_OK")
</pallas_src>

<mosaic_0001>
module attributes {stable_mosaic.version = 11 : i64} {
  func.func @_vdropout_kernel(%arg0: i32, %arg1: memref<1xi32, #tpu.memory_space<smem>>, %arg2: memref<16x384xf32, #tpu.memory_space<vmem>>, %arg3: memref<16x384xf32, #tpu.memory_space<vmem>>) attributes {dimension_semantics = [#tpu.dimension_semantics<arbitrary>], iteration_bounds = array<i64: 1>, scalar_prefetch = 0 : i64, scratch_operands = 0 : i64, tpu.core_type = #tpu.core_type<tc>, window_params = [{transform_indices = @transform_0, window_bounds = array<i64: 1>}, {transform_indices = @transform_1, window_bounds = array<i64: 16, 384>}, {transform_indices = @transform_2, window_bounds = array<i64: 16, 384>}]} {
    %0 = tpu.iota {dimensions = array<i32: 1>} : vector<1x384xi32>
    %c21846_i32 = arith.constant 21846 : i32
    %1 = vector.broadcast %c21846_i32 : i32 to vector<1x384xi32>
    %2 = arith.muli %0, %1 : vector<1x384xi32>
    %c16_i32 = arith.constant 16 : i32
    %3 = vector.broadcast %c16_i32 : i32 to vector<1x384xi32>
    %4 = arith.shrsi %2, %3 : vector<1x384xi32>
    %5 = tpu.iota {dimensions = array<i32: 0>} : vector<16x1xi32>
    %c16_i32_0 = arith.constant 16 : i32
    %6 = arith.muli %arg0, %c16_i32_0 : i32
    %7 = vector.broadcast %6 : i32 to vector<16x1xi32>
    %8 = arith.addi %5, %7 : vector<16x1xi32>
    %c128_i32 = arith.constant 128 : i32
    %9 = vector.broadcast %c128_i32 : i32 to vector<16x1xi32>
    %10 = arith.muli %8, %9 : vector<16x1xi32>
    %11 = vector.broadcast %10 : vector<16x1xi32> to vector<16x384xi32>
    %12 = vector.broadcast %4 : vector<1x384xi32> to vector<16x384xi32>
    %13 = arith.addi %11, %12 : vector<16x384xi32>
    %c0 = arith.constant 0 : index
    %14 = memref.load %arg1[%c0] : memref<1xi32, #tpu.memory_space<smem>>
    %c-1640531535_i32 = arith.constant -1640531535 : i32
    %15 = arith.muli %14, %c-1640531535_i32 : i32
    %16 = vector.broadcast %15 : i32 to vector<16x384xi32>
    %17 = arith.xori %13, %16 : vector<16x384xi32>
    %c-2048144789_i32 = arith.constant -2048144789 : i32
    %18 = vector.broadcast %c-2048144789_i32 : i32 to vector<16x384xi32>
    %19 = arith.muli %17, %18 : vector<16x384xi32>
    %c16_i32_1 = arith.constant 16 : i32
    %20 = vector.broadcast %c16_i32_1 : i32 to vector<16x384xi32>
    %21 = arith.shrui %19, %20 : vector<16x384xi32>
    %22 = arith.xori %19, %21 : vector<16x384xi32>
    %c-1028477387_i32 = arith.constant -1028477387 : i32
    %23 = vector.broadcast %c-1028477387_i32 : i32 to vector<16x384xi32>
    %24 = arith.muli %22, %23 : vector<16x384xi32>
    %c8_i32 = arith.constant 8 : i32
    %25 = vector.broadcast %c8_i32 : i32 to vector<16x384xi32>
    %26 = arith.shrui %24, %25 : vector<16x384xi32>
    %c12582912_i32 = arith.constant 12582912 : i32
    %27 = vector.broadcast %c12582912_i32 : i32 to vector<16x384xi32>
    %28 = arith.cmpi slt, %26, %27 : vector<16x384xi32>
    %cst = arith.constant 1.33333337 : f32
    %cst_2 = arith.constant 0.000000e+00 : f32
    %29 = vector.broadcast %cst : f32 to vector<16x384xf32>
    %30 = vector.broadcast %cst_2 : f32 to vector<16x384xf32>
    %31 = arith.select %28, %29, %30 : vector<16x384xi1>, vector<16x384xf32>
    %c0_3 = arith.constant 0 : index
    %c0_4 = arith.constant 0 : index
    %32 = vector.load %arg2[%c0_3, %c0_4] : memref<16x384xf32, #tpu.memory_space<vmem>>, vector<16x384xf32>
    %33 = arith.mulf %32, %31 : vector<16x384xf32>
    %c0_5 = arith.constant 0 : index
    %c0_6 = arith.constant 0 : index
    %34 = vector.load %arg3[%c0_5, %c0_6] : memref<16x384xf32, #tpu.memory_space<vmem>>, vector<16x384xf32>
    tpu.vector_store %arg3[%c0_5, %c0_6], %33 {strides = array<i32>} : memref<16x384xf32, #tpu.memory_space<vmem>>, vector<16x384xf32>,
    return
  }
  func.func @transform_0(%arg0: i32) -> i32 {
    %c0_i32 = arith.constant 0 : i32
    %c0_i32_0 = arith.constant 0 : i32
    return %c0_i32 : i32
  }
  func.func @transform_1(%arg0: i32) -> (i32, i32) {
    %c0_i32 = arith.constant 0 : i32
    %c0_i32_0 = arith.constant 0 : i32
    return %arg0, %c0_i32 : i32, i32
  }
  func.func @transform_2(%arg0: i32) -> (i32, i32) {
    %c0_i32 = arith.constant 0 : i32
    %c0_i32_0 = arith.constant 0 : i32
    return %arg0, %c0_i32 : i32, i32
  }
}

</mosaic_0001>

<bundles_post_ra>
// kernel: tpu_custom_call.1
= control target key start
LH: loop header
LB: loop body
LE: loop exit
PB: predicated region body
PF: predicated region fallthrough
CT: control target
= control target key end

     0   :  { %8 = vsyncpa [#allocation4], 0  ;;  %s234_s0 = inlined_call_operand.<no memory space> [shape: s32[1], index: 0, kind: input, shape index: {}]   ;;  %s235_s1 = inlined_call_operand.hbm [shape: f32[16,384], index: 1, kind: input, shape index: {}]   ;;  %s236_s2 = inlined_call_operand.hbm [shape: f32[16,384], index: 2, kind: output, shape index: {}]  }
   0x1   :  { %9 = vsyncpa [#allocation5], 0  ;;  %s16_s11 = sshll.u32 %s235_s1, 4  ;;  %s199_s12 = smov [#allocation3]   ;;  %s17_s11 = int_to_ptr.hbm [resolvable:$true] %s16_s11 }
   0x2   :  { %s18_s13 = sshll.u32 %s199_s12, 4  ;;  %s200_s14 = smov 384   ;;  %s19_s13 = int_to_ptr.vmem [resolvable:$true] %s18_s13 }
   0x3   :  { %s201_s15 = smov 24  }
   0x4   :  { %24 = dma.hbm_to_vmem [thread:$0]  %s17_s11, 768, %s19_s13, [#allocation4], %s200_s14, %s200_s14, %s201_s15  }
   0x5   :  { %195 = dma.done.wait [#allocation4], 768  }
   0x6   :  { %196 = vsyncadd [#allocation4], 4294966528  ;;  %v29_v0 = vlaneseq  ;;  %s55_s18 = smul.u32 2654435761, %s234_s0  ;;  %v105_v50 = vld [vmem:[#allocation3] sm:$0xff]  ;;  %v106_v55 = vld [vmem:[#allocation3 + $0x8] sm:$0xff] }
   0x7   :  { %v108_v57 = vld [vmem:[#allocation3 + $0x18] sm:$0xff]  ;;  %v202_v58 = vmov 0.0   ;;  %v107_v60 = vld [vmem:[#allocation3 + $0x10] sm:$0xff]  ;;  %s203_s0 = smov [#allocation6]   ;;  %s129_s21 = sshll.u32 %s236_s2, 4  ;;  %s130_s21 = int_to_ptr.hbm [resolvable:$true] %s129_s21 }
   0x8   :  { %v30_v1 = vand.u32 127, %v29_v0  ;;  %v40_v2 = vshrl.u32 %v29_v0, 7  ;;  %v56_v11 = vstv %s55_s18  ;;  %s127_s1 = sshll.u32 %s203_s0, 4  ;;  %s128_s1 = int_to_ptr.vmem [resolvable:$true] %s127_s1 }
   0xa   :  { %v33_v3 = vmul.u32 21846, %v30_v1  ;;  %v46_v4 = vmul.u32 128, %v40_v2  ;;  %v31_v5 = vadd.s32 128, %v30_v1  ;;  %v32_v6 = vadd.s32 256, %v30_v1  ;;  %v109_v1 = vld [vmem:[#allocation3 + $0x20] sm:$0xff] }
   0xb   :  { %v41_v7 = vadd.s32 8, %v40_v2 }
   0xc   :  { %v36_v8 = vshra.s32 %v33_v3, 16  ;;  %v34_v9 = vmul.u32 21846, %v31_v5  ;;  %v35_v10 = vmul.u32 21846, %v32_v6  ;;  %v110_v5 = vld [vmem:[#allocation3 + $0x28] sm:$0xff] }
   0xd   :  { %v47_v12 = vmul.u32 128, %v41_v7 }
   0xe   :  { %v48_v13 = vadd.s32 %v46_v4, %v36_v8  ;;  %v37_v14 = vshra.s32 %v34_v9, 16  ;;  %v38_v15 = vshra.s32 %v35_v10, 16 }
   0xf   :  { %v51_v16 = vadd.s32 %v47_v12, %v36_v8 }
  0x10   :  { %v57_v17 = vxor.u32 %v56_v11, %v48_v13  ;;  %v49_v18 = vadd.s32 %v46_v4, %v37_v14  ;;  %v50_v19 = vadd.s32 %v46_v4, %v38_v15  ;;  %v52_v20 = vadd.s32 %v47_v12, %v37_v14 }
  0x11   :  { %v60_v21 = vxor.u32 %v56_v11, %v51_v16  ;;  %v53_v22 = vadd.s32 %v47_v12, %v38_v15 }
  0x12   :  { %v63_v23 = vmul.u32 2246822507, %v57_v17  ;;  %v58_v24 = vxor.u32 %v56_v11, %v49_v18  ;;  %v59_v25 = vxor.u32 %v56_v11, %v50_v19  ;;  %v61_v26 = vxor.u32 %v56_v11, %v52_v20 }
  0x13   :  { %v66_v27 = vmul.u32 2246822507, %v60_v21  ;;  %v62_v28 = vxor.u32 %v56_v11, %v53_v22 }
  0x14   :  { %v69_v29 = vshrl.u32 %v63_v23, 16  ;;  %v64_v30 = vmul.u32 2246822507, %v58_v24  ;;  %v65_v31 = vmul.u32 2246822507, %v59_v25 }
  0x15   :  { %v72_v32 = vshrl.u32 %v66_v27, 16  ;;  %v67_v33 = vmul.u32 2246822507, %v61_v26  ;;  %v68_v34 = vmul.u32 2246822507, %v62_v28 }
  0x16   :  { %v75_v35 = vxor.u32 %v69_v29, %v63_v23  ;;  %v70_v36 = vshrl.u32 %v64_v30, 16  ;;  %v71_v37 = vshrl.u32 %v65_v31, 16 }
  0x17   :  { %v78_v38 = vxor.u32 %v72_v32, %v66_v27  ;;  %v73_v39 = vshrl.u32 %v67_v33, 16  ;;  %v74_v40 = vshrl.u32 %v68_v34, 16 }
  0x18   :  { %v81_v41 = vmul.u32 3266489909, %v75_v35  ;;  %v76_v42 = vxor.u32 %v70_v36, %v64_v30  ;;  %v77_v43 = vxor.u32 %v71_v37, %v65_v31 }
  0x19   :  { %v84_v44 = vmul.u32 3266489909, %v78_v38  ;;  %v79_v45 = vxor.u32 %v73_v39, %v67_v33  ;;  %v80_v46 = vxor.u32 %v74_v40, %v68_v34 }
  0x1a   :  { %v87_v47 = vshrl.u32 %v81_v41, 8  ;;  %v82_v48 = vmul.u32 3266489909, %v76_v42  ;;  %v83_v49 = vmul.u32 3266489909, %v77_v43 }
  0x1b   :  { %v90_v51 = vshrl.u32 %v84_v44, 8  ;;  %v85_v52 = vmul.u32 3266489909, %v79_v45  ;;  %v86_v53 = vmul.u32 3266489909, %v80_v46 }
  0x1c   :  { %vm93_vm0 = vcmp.lt.s32.totalorder %v87_v47, 12582912  ;;  %v88_v54 = vshrl.u32 %v82_v48, 8  ;;  %v89_v56 = vshrl.u32 %v83_v49, 8 }
  0x1d   :  { %v99_v59 = vsel %vm93_vm0, 1.3333334, %v202_v58  ;;  %vm96_vm1 = vcmp.lt.s32.totalorder %v90_v51, 12582912  ;;  %v91_v61 = vshrl.u32 %v85_v52, 8  ;;  %v92_v62 = vshrl.u32 %v86_v53, 8 }
  0x1e   :  { %v111_v63 = vmul.f32 %v105_v50, %v99_v59  ;;  %vm94_vm2 = vcmp.lt.s32.totalorder %v88_v54, 12582912  ;;  %vm95_vm3 = vcmp.lt.s32.totalorder %v89_v56, 12582912  ;;  %v102_v0 = vsel %vm96_vm1, 1.3333334, %v202_v58 }
  0x1f   :  { %v100_v2 = vsel %vm94_vm2, 1.3333334, %v202_v58  ;;  %v101_v3 = vsel %vm95_vm3, 1.3333334, %v202_v58  ;;  %v114_v4 = vmul.f32 %v108_v57, %v102_v0  ;;  %vm97_vm4 = vcmp.lt.s32.totalorder %v91_v61, 12582912 }
  0x20   :  { %117 = vst [vmem:[#allocation6] sm:$0xff] %v111_v63  ;;  %v112_v6 = vmul.f32 %v106_v55, %v100_v2  ;;  %v113_v7 = vmul.f32 %v107_v60, %v101_v3  ;;  %v103_v8 = vsel %vm97_vm4, 1.3333334, %v202_v58  ;;  %vm98_vm5 = vcmp.lt.s32.totalorder %v92_v62, 12582912 }
  0x21   :  { %120 = vst [vmem:[#allocation6 + $0x18] sm:$0xff] %v114_v4  ;;  %v115_v9 = vmul.f32 %v109_v1, %v103_v8  ;;  %v104_v10 = vsel %vm98_vm5, 1.3333334, %v202_v58 }
  0x22   :  { %118 = vst [vmem:[#allocation6 + $0x8] sm:$0xff] %v112_v6  ;;  %v116_v11 = vmul.f32 %v110_v5, %v104_v10 }
  0x23   :  { %119 = vst [vmem:[#allocation6 + $0x10] sm:$0xff] %v113_v7 }
  0x24   :  { %121 = vst [vmem:[#allocation6 + $0x20] sm:$0xff] %v115_v9 }
  0x25   :  { %122 = vst [vmem:[#allocation6 + $0x28] sm:$0xff] %v116_v11 }
  0x26   :  { %135 = dma.vmem_to_hbm [thread:$0]  %s128_s1, 768, %s130_s21, [#allocation5], %s200_s14, %s200_s14, %s201_s15  }
  0x27   :  { %197 = dma.done.wait [#allocation5], 768  }
  0x28   :  { %198 = vsyncadd [#allocation5], 4294966528 }
  0x29   :  { %140 = vsyncpa [#allocation4], 1 }
  0x2a   :  { %141 = vsyncpa [#allocation5], 1 }

</bundles_post_ra>
